<compile_context>
chip_gen: v5e
topology: v5e:2x2
jax: 0.10.0
libtpu: 0.0.40
codegen_flags: <defaults>
</compile_context>

<pallas_src>
import jax
import jax.numpy as jnp
from jax.experimental import pallas as pl
from jax.experimental.pallas import tpu as pltpu

# ----------------------------- config (scaled-down roberta) -----------------
VOCAB = 64
MAX_POS = 16            # >= S + pad_idx + 1
TYPE_VOCAB = 1
HIDDEN = 64             # roberta-base: 768
NUM_HEADS = 4           # roberta-base: 12
HEAD_DIM = HIDDEN // NUM_HEADS
INTERMEDIATE = 128      # roberta-base: 3072
NUM_LAYERS = 2          # roberta-base: 12
NUM_LABELS = 3
OUT_PAD = 128           # lane-dense classifier width; real logits are [:NUM_LABELS]
PAD_ID = 1              # roberta padding_idx
LN_EPS = 1e-5
ATTN_SCALE = 1.0 / (HEAD_DIM ** 0.5)


# ----------------------------- spec helpers ----------------------------------


def _vmem_spec():
    return pl.BlockSpec(memory_space=pltpu.MemorySpace.VMEM)


def _full_spec(arr):
    # Whole-array block (same block index every grid step -> fetched once).
    nd = arr.ndim
    return pl.BlockSpec(arr.shape, lambda b, _nd=nd: (0,) * _nd)


# ----------------------------- in-kernel math helpers -------------------------


def _layernorm(x, g, b):
    mu = jnp.mean(x, axis=-1, keepdims=True)
    var = jnp.mean((x - mu) * (x - mu), axis=-1, keepdims=True)
    return (x - mu) * jax.lax.rsqrt(var + LN_EPS) * g + b


def _gelu(x):
    # TODO(synk): Roberta uses exact erf-GELU; tanh approximation used here.
    c = 0.7978845608028654  # sqrt(2/pi)
    return 0.5 * x * (1.0 + jnp.tanh(c * (x + 0.044715 * x * x * x)))


def _matmul(x_f32, w_ref, b_ref):
    # bf16 MXU operands, f32 accumulation, f32 bias add.
    return jnp.dot(x_f32.astype(jnp.bfloat16), w_ref[...],
                   preferred_element_type=jnp.float32) + b_ref[...]


# ----------------------------- Pallas kernels ---------------------------------


def embed_layernorm_kernel(x_ref, g_ref, b_ref, o_ref):
    # Dedicated LN for embeddings (no fake zero residual).
    o_ref[...] = _layernorm(x_ref[...], g_ref[...], b_ref[...]).astype(o_ref.dtype)


def encoder_layer_kernel(h_ref, bias_ref,
                         qkv_w_ref, qkv_b_ref, ao_w_ref, ao_b_ref,
                         ln1_g_ref, ln1_b_ref, fi_w_ref, fi_b_ref,
                         fo_w_ref, fo_b_ref, ln2_g_ref, ln2_b_ref,
                         o_ref):
    # One batch element per grid step: h_ref is (S, H), bias_ref is (1, 1, S).
    h = h_ref[...]                                    # (S, H) f32
    bias = bias_ref[0]                                # (1, S) additive padding mask

    # ---- fused QKV projection: one MXU matmul with N = 3H -------------------
    qkv = _matmul(h, qkv_w_ref, qkv_b_ref)            # (S, 3H) f32, VMEM resident

    # ---- per-head attention; head split = static column slices --------------
    ctx_heads = []
    for hh in range(NUM_HEADS):
        q_h = qkv[:, hh * HEAD_DIM:(hh + 1) * HEAD_DIM]
        k_h = qkv[:, HIDDEN + hh * HEAD_DIM:HIDDEN + (hh + 1) * HEAD_DIM]
        v_h = qkv[:, 2 * HIDDEN + hh * HEAD_DIM:2 * HIDDEN + (hh + 1) * HEAD_DIM]
        s = jax.lax.dot_general(
            q_h.astype(jnp.bfloat16), k_h.astype(jnp.bfloat16),
            (((1,), (1,)), ((), ())),                 # q @ k^T
            preferred_element_type=jnp.float32) * ATTN_SCALE
        s = s + bias                                  # broadcast (1,S) over query rows
        m = jnp.max(s, axis=-1, keepdims=True)
        p = jnp.exp(s - m)
        l = jnp.sum(p, axis=-1, keepdims=True)
        p = p * pl.reciprocal(l, approx=True)         # EUP slot, ~free
        ctx_heads.append(jnp.dot(p.astype(jnp.bfloat16), v_h.astype(jnp.bfloat16),
                                 preferred_element_type=jnp.float32))
    ctx = jnp.concatenate(ctx_heads, axis=-1)         # (S, H)

    # ---- attention output projection + residual + LN ------------------------
    attn = _matmul(ctx, ao_w_ref, ao_b_ref)
    h1 = _layernorm(attn + h, ln1_g_ref[...], ln1_b_ref[...])

    # ---- FFN (GELU) + residual + LN ------------------------------------------
    inter = _gelu(_matmul(h1, fi_w_ref, fi_b_ref))
    ffn = _matmul(inter, fo_w_ref, fo_b_ref)
    o_ref[...] = _layernorm(ffn + h1, ln2_g_ref[...], ln2_b_ref[...]).astype(o_ref.dtype)


def classifier_kernel(x_ref, w_ref, b_ref, o_ref):
    # Lane-dense output (OUT_PAD = 128 columns); real logits sliced outside.
    o_ref[...] = _matmul(x_ref[...], w_ref, b_ref).astype(o_ref.dtype)


# ----------------------------- pallas_call wrappers ---------------------------


def embed_layernorm(x, g, b):
    return pl.pallas_call(
        embed_layernorm_kernel,
        out_shape=jax.ShapeDtypeStruct(x.shape, jnp.float32),
        in_specs=[_vmem_spec()] * 3,
        out_specs=_vmem_spec(),
    )(x, g, b)


def encoder_layer(h, bias, p, B, S):
    weights = (p["qkv_w"], p["qkv_b"], p["ao_w"], p["ao_b"],
               p["ln1_g"], p["ln1_b"], p["fi_w"], p["fi_b"],
               p["fo_w"], p["fo_b"], p["ln2_g"], p["ln2_b"])
    return pl.pallas_call(
        encoder_layer_kernel,
        out_shape=jax.ShapeDtypeStruct((B * S, HIDDEN), jnp.float32),
        grid=(B,),
        in_specs=[pl.BlockSpec((S, HIDDEN), lambda b: (b, 0)),
                  pl.BlockSpec((1, 1, S), lambda b: (b, 0, 0))]
                 + [_full_spec(w) for w in weights],
        out_specs=pl.BlockSpec((S, HIDDEN), lambda b: (b, 0)),
        compiler_params=pltpu.CompilerParams(
            dimension_semantics=("parallel",)),   # shards batch across v7x's 2 TCs
    )(h, bias, *weights)


def classifier(x, w, b):
    return pl.pallas_call(
        classifier_kernel,
        out_shape=jax.ShapeDtypeStruct((x.shape[0], OUT_PAD), jnp.float32),
        in_specs=[_vmem_spec()] * 3,
        out_specs=_vmem_spec(),
    )(x, w, b)


# ----------------------------- parameters -------------------------------------


def init_params(key):
    def dense(k, fan_in, fan_out):
        kw, _ = jax.random.split(k)
        w = (jax.random.normal(kw, (fan_in, fan_out), jnp.float32) * 0.02
             ).astype(jnp.bfloat16)                        # bf16 MXU weights
        b = jnp.zeros((1, fan_out), jnp.float32)           # f32 bias / accumulation
        return w, b

    keys = jax.random.split(key, 4 + NUM_LAYERS)
    params = {
        "word_emb": jax.random.normal(keys[0], (VOCAB, HIDDEN), jnp.float32) * 0.02,
        "pos_emb": jax.random.normal(keys[1], (MAX_POS, HIDDEN), jnp.float32) * 0.02,
        "type_emb": jax.random.normal(keys[2], (TYPE_VOCAB, HIDDEN), jnp.float32) * 0.02,
        "emb_ln_g": jnp.ones((1, HIDDEN), jnp.float32),
        "emb_ln_b": jnp.zeros((1, HIDDEN), jnp.float32),
        "layers": [],
    }
    for li in range(NUM_LAYERS):
        lk = jax.random.split(keys[4 + li], 4)
        qkv_w, qkv_b = dense(lk[0], HIDDEN, 3 * HIDDEN)     # fused Q/K/V
        ao_w, ao_b = dense(lk[1], HIDDEN, HIDDEN)
        fi_w, fi_b = dense(lk[2], HIDDEN, INTERMEDIATE)
        fo_w, fo_b = dense(lk[3], INTERMEDIATE, HIDDEN)
        params["layers"].append({
            "qkv_w": qkv_w, "qkv_b": qkv_b,
            "ao_w": ao_w, "ao_b": ao_b,
            "ln1_g": jnp.ones((1, HIDDEN), jnp.float32),
            "ln1_b": jnp.zeros((1, HIDDEN), jnp.float32),
            "fi_w": fi_w, "fi_b": fi_b, "fo_w": fo_w, "fo_b": fo_b,
            "ln2_g": jnp.ones((1, HIDDEN), jnp.float32),
            "ln2_b": jnp.zeros((1, HIDDEN), jnp.float32),
        })
    ow_key = jax.random.fold_in(key, 12345)
    out_w = jnp.zeros((HIDDEN, OUT_PAD), jnp.float32)
    out_w = out_w.at[:, :NUM_LABELS].set(
        jax.random.normal(ow_key, (HIDDEN, NUM_LABELS), jnp.float32) * 0.02)
    params["out_w"] = out_w.astype(jnp.bfloat16)           # lane-dense padded head
    params["out_b"] = jnp.zeros((1, OUT_PAD), jnp.float32)
    return params


# ----------------------------- forward -----------------------------------------


def xlmr_forward(params, ids, mask):
    """ids: (B, S) int32, mask: (B, S) int32 -> logits (B, NUM_LABELS)."""
    B, S = ids.shape
    # Roberta position ids: cumsum over non-pad tokens, offset by padding_idx.
    not_pad = (ids != PAD_ID).astype(jnp.int32)
    pos_ids = jnp.cumsum(not_pad, axis=1) * not_pad + PAD_ID

    we = jnp.take(params["word_emb"], ids, axis=0)          # (B,S,H)
    pe = jnp.take(params["pos_emb"], pos_ids, axis=0)
    te = params["type_emb"][0][None, None, :]                # token-type 0 broadcast
    emb = (we + pe + te).reshape(B * S, HIDDEN).astype(jnp.float32)

    h = embed_layernorm(emb, params["emb_ln_g"], params["emb_ln_b"])

    # Per-batch additive padding bias; broadcast over heads / query rows in-kernel.
    bias = ((1.0 - mask.astype(jnp.float32)) * -1e9).reshape(B, 1, S)

    for p in params["layers"]:
        h = encoder_layer(h, bias, p, B, S)

    last_tok = h.reshape(B, S, HIDDEN)[:, -1, :]             # == hidden_states[0][:, -1, :]
    logits = classifier(last_tok, params["out_w"], params["out_b"])[:, :NUM_LABELS]
    return logits


# ----------------------------- main --------------------------------------------

if __name__ == "__main__":
    B, S = 2, 8
    key = jax.random.PRNGKey(0)
    k_ids, k_params = jax.random.split(key)

    ids = jax.random.randint(k_ids, (B, S), minval=2, maxval=VOCAB, dtype=jnp.int32)
    mask = jnp.ones((B, S), dtype=jnp.int32)

    params = init_params(k_params)

    logits = jax.jit(xlmr_forward)(params, ids, mask)
    jax.block_until_ready(logits)
    assert logits.shape == (B, NUM_LABELS)
    print("KERNEL_OK")
</pallas_src>

<mosaic_0001>
module attributes {stable_mosaic.version = 11 : i64} {
  func.func @embed_layernorm_kernel(%arg0: memref<16x64xf32, #tpu.memory_space<vmem>>, %arg1: memref<1x64xf32, #tpu.memory_space<vmem>>, %arg2: memref<1x64xf32, #tpu.memory_space<vmem>>, %arg3: memref<16x64xf32, #tpu.memory_space<vmem>>) attributes {dimension_semantics = [], scalar_prefetch = 0 : i64, scratch_operands = 0 : i64, tpu.core_type = #tpu.core_type<tc>} {
    %c0 = arith.constant 0 : index
    %c0_0 = arith.constant 0 : index
    %0 = vector.load %arg0[%c0, %c0_0] : memref<16x64xf32, #tpu.memory_space<vmem>>, vector<16x64xf32>
    %c0_1 = arith.constant 0 : index
    %c0_2 = arith.constant 0 : index
    %1 = vector.load %arg1[%c0_1, %c0_2] : memref<1x64xf32, #tpu.memory_space<vmem>>, vector<1x64xf32>
    %c0_3 = arith.constant 0 : index
    %c0_4 = arith.constant 0 : index
    %2 = vector.load %arg2[%c0_3, %c0_4] : memref<1x64xf32, #tpu.memory_space<vmem>>, vector<1x64xf32>
    %cst = arith.constant dense<0.000000e+00> : vector<16xf32>
    %3 = vector.multi_reduction <add>, %0, %cst [1] : vector<16x64xf32> to vector<16xf32>
    %4 = vector.shape_cast %3 : vector<16xf32> to vector<16x1xf32>
    %cst_5 = arith.constant 6.400000e+01 : f32
    %5 = vector.broadcast %cst_5 : f32 to vector<16x1xf32>
    %6 = arith.divf %4, %5 : vector<16x1xf32>
    %7 = vector.broadcast %6 : vector<16x1xf32> to vector<16x64xf32>
    %8 = arith.subf %0, %7 : vector<16x64xf32>
    %9 = vector.broadcast %6 : vector<16x1xf32> to vector<16x64xf32>
    %10 = arith.subf %0, %9 : vector<16x64xf32>
    %11 = arith.mulf %8, %10 : vector<16x64xf32>
    %cst_6 = arith.constant dense<0.000000e+00> : vector<16xf32>
    %12 = vector.multi_reduction <add>, %11, %cst_6 [1] : vector<16x64xf32> to vector<16xf32>
    %13 = vector.shape_cast %12 : vector<16xf32> to vector<16x1xf32>
    %cst_7 = arith.constant 6.400000e+01 : f32
    %14 = vector.broadcast %cst_7 : f32 to vector<16x1xf32>
    %15 = arith.divf %13, %14 : vector<16x1xf32>
    %16 = vector.broadcast %6 : vector<16x1xf32> to vector<16x64xf32>
    %17 = arith.subf %0, %16 : vector<16x64xf32>
    %cst_8 = arith.constant 9.99999974E-6 : f32
    %18 = vector.broadcast %cst_8 : f32 to vector<16x1xf32>
    %19 = arith.addf %15, %18 : vector<16x1xf32>
    %20 = math.rsqrt %19 : vector<16x1xf32>
    %21 = vector.broadcast %20 : vector<16x1xf32> to vector<16x64xf32>
    %22 = arith.mulf %17, %21 : vector<16x64xf32>
    %23 = vector.broadcast %1 : vector<1x64xf32> to vector<16x64xf32>
    %24 = arith.mulf %22, %23 : vector<16x64xf32>
    %25 = vector.broadcast %2 : vector<1x64xf32> to vector<16x64xf32>
    %26 = arith.addf %24, %25 : vector<16x64xf32>
    %c0_9 = arith.constant 0 : index
    %c0_10 = arith.constant 0 : index
    %27 = vector.load %arg3[%c0_9, %c0_10] : memref<16x64xf32, #tpu.memory_space<vmem>>, vector<16x64xf32>
    tpu.vector_store %arg3[%c0_9, %c0_10], %26 {strides = array<i32>} : memref<16x64xf32, #tpu.memory_space<vmem>>, vector<16x64xf32>,
    return
  }
}

module attributes {stable_mosaic.version = 11 : i64} {
  func.func @classifier_kernel(%arg0: memref<2x64xf32, #tpu.memory_space<vmem>>, %arg1: memref<64x128xbf16, #tpu.memory_space<vmem>>, %arg2: memref<1x128xf32, #tpu.memory_space<vmem>>, %arg3: memref<2x128xf32, #tpu.memory_space<vmem>>) attributes {dimension_semantics = [], scalar_prefetch = 0 : i64, scratch_operands = 0 : i64, tpu.core_type = #tpu.core_type<tc>} {
    %c0 = arith.constant 0 : index
    %c0_0 = arith.constant 0 : index
    %0 = vector.load %arg0[%c0, %c0_0] : memref<2x64xf32, #tpu.memory_space<vmem>>, vector<2x64xf32>
    %1 = arith.truncf %0 : vector<2x64xf32> to vector<2x64xbf16>
    %c0_1 = arith.constant 0 : index
    %c0_2 = arith.constant 0 : index
    %2 = vector.load %arg1[%c0_1, %c0_2] : memref<64x128xbf16, #tpu.memory_space<vmem>>, vector<64x128xbf16>
    %cst = arith.constant dense<0.000000e+00> : vector<2x128xf32>
    %3 = tpu.matmul %1, %2, %cst {dimension_numbers = #tpu.dot_dimension_numbers<[1], [0], [0], [1], [0, 0, 1, 1], [], []>} : vector<2x64xbf16>, vector<64x128xbf16>, vector<2x128xf32> -> vector<2x128xf32>
    %c0_3 = arith.constant 0 : index
    %c0_4 = arith.constant 0 : index
    %4 = vector.load %arg2[%c0_3, %c0_4] : memref<1x128xf32, #tpu.memory_space<vmem>>, vector<1x128xf32>
    %5 = vector.broadcast %4 : vector<1x128xf32> to vector<2x128xf32>
    %6 = arith.addf %3, %5 : vector<2x128xf32>
    %c0_5 = arith.constant 0 : index
    %c0_6 = arith.constant 0 : index
    %7 = vector.load %arg3[%c0_5, %c0_6] : memref<2x128xf32, #tpu.memory_space<vmem>>, vector<2x128xf32>
    tpu.vector_store %arg3[%c0_5, %c0_6], %6 {strides = array<i32>} : memref<2x128xf32, #tpu.memory_space<vmem>>, vector<2x128xf32>,
    return
  }
}

module attributes {stable_mosaic.version = 11 : i64} {
  func.func @encoder_layer_kernel(%arg0: i32, %arg1: memref<8x64xf32, #tpu.memory_space<vmem>>, %arg2: memref<1x1x8xf32, #tpu.memory_space<vmem>>, %arg3: memref<64x192xbf16, #tpu.memory_space<vmem>>, %arg4: memref<1x192xf32, #tpu.memory_space<vmem>>, %arg5: memref<64x64xbf16, #tpu.memory_space<vmem>>, %arg6: memref<1x64xf32, #tpu.memory_space<vmem>>, %arg7: memref<1x64xf32, #tpu.memory_space<vmem>>, %arg8: memref<1x64xf32, #tpu.memory_space<vmem>>, %arg9: memref<64x128xbf16, #tpu.memory_space<vmem>>, %arg10: memref<1x128xf32, #tpu.memory_space<vmem>>, %arg11: memref<128x64xbf16, #tpu.memory_space<vmem>>, %arg12: memref<1x64xf32, #tpu.memory_space<vmem>>, %arg13: memref<1x64xf32, #tpu.memory_space<vmem>>, %arg14: memref<1x64xf32, #tpu.memory_space<vmem>>, %arg15: memref<8x64xf32, #tpu.memory_space<vmem>>) attributes {dimension_semantics = [#tpu.dimension_semantics<parallel>], iteration_bounds = array<i64: 2>, scalar_prefetch = 0 : i64, scratch_operands = 0 : i64, tpu.core_type = #tpu.core_type<tc>, window_params = [{transform_indices = @transform_0, window_bounds = array<i64: 8, 64>}, {transform_indices = @transform_1, window_bounds = array<i64: 1, 1, 8>}, {pipeline_mode = #tpu.pipeline_mode<synchronous>, transform_indices = @transform_2, window_bounds = array<i64: 64, 192>}, {pipeline_mode = #tpu.pipeline_mode<synchronous>, transform_indices = @transform_3, window_bounds = array<i64: 1, 192>}, {pipeline_mode = #tpu.pipeline_mode<synchronous>, transform_indices = @transform_4, window_bounds = array<i64: 64, 64>}, {pipeline_mode = #tpu.pipeline_mode<synchronous>, transform_indices = @transform_5, window_bounds = array<i64: 1, 64>}, {pipeline_mode = #tpu.pipeline_mode<synchronous>, transform_indices = @transform_6, window_bounds = array<i64: 1, 64>}, {pipeline_mode = #tpu.pipeline_mode<synchronous>, transform_indices = @transform_7, window_bounds = array<i64: 1, 64>}, {pipeline_mode = #tpu.pipeline_mode<synchronous>, transform_indices = @transform_8, window_bounds = array<i64: 64, 128>}, {pipeline_mode = #tpu.pipeline_mode<synchronous>, transform_indices = @transform_9, window_bounds = array<i64: 1, 128>}, {pipeline_mode = #tpu.pipeline_mode<synchronous>, transform_indices = @transform_10, window_bounds = array<i64: 128, 64>}, {pipeline_mode = #tpu.pipeline_mode<synchronous>, transform_indices = @transform_11, window_bounds = array<i64: 1, 64>}, {pipeline_mode = #tpu.pipeline_mode<synchronous>, transform_indices = @transform_12, window_bounds = array<i64: 1, 64>}, {pipeline_mode = #tpu.pipeline_mode<synchronous>, transform_indices = @transform_13, window_bounds = array<i64: 1, 64>}, {transform_indices = @transform_14, window_bounds = array<i64: 8, 64>}]} {
    %c0 = arith.constant 0 : index
    %c0_0 = arith.constant 0 : index
    %0 = vector.load %arg1[%c0, %c0_0] : memref<8x64xf32, #tpu.memory_space<vmem>>, vector<8x64xf32>
    %c0_1 = arith.constant 0 : index
    %c0_2 = arith.constant 0 : index
    %c0_3 = arith.constant 0 : index
    %1 = vector.load %arg2[%c0_1, %c0_2, %c0_3] : memref<1x1x8xf32, #tpu.memory_space<vmem>>, vector<1x1x8xf32>
    %2 = vector.shape_cast %1 : vector<1x1x8xf32> to vector<1x8xf32>
    %3 = arith.truncf %0 : vector<8x64xf32> to vector<8x64xbf16>
    %c0_4 = arith.constant 0 : index
    %c0_5 = arith.constant 0 : index
    %4 = vector.load %arg3[%c0_4, %c0_5] : memref<64x192xbf16, #tpu.memory_space<vmem>>, vector<64x192xbf16>
    %cst = arith.constant dense<0.000000e+00> : vector<8x192xf32>
    %5 = tpu.matmul %3, %4, %cst {dimension_numbers = #tpu.dot_dimension_numbers<[1], [0], [0], [1], [0, 0, 1, 1], [], []>} : vector<8x64xbf16>, vector<64x192xbf16>, vector<8x192xf32> -> vector<8x192xf32>
    %c0_6 = arith.constant 0 : index
    %c0_7 = arith.constant 0 : index
    %6 = vector.load %arg4[%c0_6, %c0_7] : memref<1x192xf32, #tpu.memory_space<vmem>>, vector<1x192xf32>
    %7 = vector.broadcast %6 : vector<1x192xf32> to vector<8x192xf32>
    %8 = arith.addf %5, %7 : vector<8x192xf32>
    %9 = vector.extract_strided_slice %8 {offsets = [0, 0], sizes = [8, 16], strides = [1, 1]} : vector<8x192xf32> to vector<8x16xf32>
    %10 = vector.extract_strided_slice %8 {offsets = [0, 64], sizes = [8, 16], strides = [1, 1]} : vector<8x192xf32> to vector<8x16xf32>
    %11 = vector.extract_strided_slice %8 {offsets = [0, 128], sizes = [8, 16], strides = [1, 1]} : vector<8x192xf32> to vector<8x16xf32>
    %12 = arith.truncf %9 : vector<8x16xf32> to vector<8x16xbf16>
    %13 = arith.truncf %10 : vector<8x16xf32> to vector<8x16xbf16>
    %cst_8 = arith.constant dense<0.000000e+00> : vector<8x8xf32>
    %14 = tpu.matmul %12, %13, %cst_8 {dimension_numbers = #tpu.dot_dimension_numbers<[1], [1], [0], [0], [0, 0, 1, 0], [], []>} : vector<8x16xbf16>, vector<8x16xbf16>, vector<8x8xf32> -> vector<8x8xf32>
    %cst_9 = arith.constant 2.500000e-01 : f32
    %15 = vector.broadcast %cst_9 : f32 to vector<8x8xf32>
    %16 = arith.mulf %14, %15 : vector<8x8xf32>
    %17 = vector.broadcast %2 : vector<1x8xf32> to vector<8x8xf32>
    %18 = arith.addf %16, %17 : vector<8x8xf32>
    %cst_10 = arith.constant dense<0xFF800000> : vector<8xf32>
    %19 = vector.multi_reduction <maximumf>, %18, %cst_10 [1] : vector<8x8xf32> to vector<8xf32>
    %20 = vector.shape_cast %19 : vector<8xf32> to vector<8x1xf32>
    %21 = vector.broadcast %20 : vector<8x1xf32> to vector<8x8xf32>
    %22 = arith.subf %18, %21 : vector<8x8xf32>
    %23 = math.exp %22 : vector<8x8xf32>
    %cst_11 = arith.constant dense<0.000000e+00> : vector<8xf32>
    %24 = vector.multi_reduction <add>, %23, %cst_11 [1] : vector<8x8xf32> to vector<8xf32>
    %25 = vector.shape_cast %24 : vector<8xf32> to vector<8x1xf32>
    %26 = tpu.reciprocal %25 {approx = true} : vector<8x1xf32> -> vector<8x1xf32>
    %27 = vector.broadcast %26 : vector<8x1xf32> to vector<8x8xf32>
    %28 = arith.mulf %23, %27 : vector<8x8xf32>
    %29 = arith.truncf %28 : vector<8x8xf32> to vector<8x8xbf16>
    %30 = arith.truncf %11 : vector<8x16xf32> to vector<8x16xbf16>
    %cst_12 = arith.constant dense<0.000000e+00> : vector<8x16xf32>
    %31 = tpu.matmul %29, %30, %cst_12 {dimension_numbers = #tpu.dot_dimension_numbers<[1], [0], [0], [1], [0, 0, 1, 1], [], []>} : vector<8x8xbf16>, vector<8x16xbf16>, vector<8x16xf32> -> vector<8x16xf32>
    %32 = vector.extract_strided_slice %8 {offsets = [0, 16], sizes = [8, 16], strides = [1, 1]} : vector<8x192xf32> to vector<8x16xf32>
    %33 = vector.extract_strided_slice %8 {offsets = [0, 80], sizes = [8, 16], strides = [1, 1]} : vector<8x192xf32> to vector<8x16xf32>
    %34 = vector.extract_strided_slice %8 {offsets = [0, 144], sizes = [8, 16], strides = [1, 1]} : vector<8x192xf32> to vector<8x16xf32>
    %35 = arith.truncf %32 : vector<8x16xf32> to vector<8x16xbf16>
    %36 = arith.truncf %33 : vector<8x16xf32> to vector<8x16xbf16>
    %cst_13 = arith.constant dense<0.000000e+00> : vector<8x8xf32>
    %37 = tpu.matmul %35, %36, %cst_13 {dimension_numbers = #tpu.dot_dimension_numbers<[1], [1], [0], [0], [0, 0, 1, 0], [], []>} : vector<8x16xbf16>, vector<8x16xbf16>, vector<8x8xf32> -> vector<8x8xf32>
    %cst_14 = arith.constant 2.500000e-01 : f32
    %38 = vector.broadcast %cst_14 : f32 to vector<8x8xf32>
    %39 = arith.mulf %37, %38 : vector<8x8xf32>
    %40 = vector.broadcast %2 : vector<1x8xf32> to vector<8x8xf32>
    %41 = arith.addf %39, %40 : vector<8x8xf32>
    %cst_15 = arith.constant dense<0xFF800000> : vector<8xf32>
    %42 = vector.multi_reduction <maximumf>, %41, %cst_15 [1] : vector<8x8xf32> to vector<8xf32>
    %43 = vector.shape_cast %42 : vector<8xf32> to vector<8x1xf32>
    %44 = vector.broadcast %43 : vector<8x1xf32> to vector<8x8xf32>
    %45 = arith.subf %41, %44 : vector<8x8xf32>
    %46 = math.exp %45 : vector<8x8xf32>
    %cst_16 = arith.constant dense<0.000000e+00> : vector<8xf32>
    %47 = vector.multi_reduction <add>, %46, %cst_16 [1] : vector<8x8xf32> to vector<8xf32>
    %48 = vector.shape_cast %47 : vector<8xf32> to vector<8x1xf32>
    %49 = tpu.reciprocal %48 {approx = true} : vector<8x1xf32> -> vector<8x1xf32>
    %50 = vector.broadcast %49 : vector<8x1xf32> to vector<8x8xf32>
    %51 = arith.mulf %46, %50 : vector<8x8xf32>
    %52 = arith.truncf %51 : vector<8x8xf32> to vector<8x8xbf16>
    %53 = arith.truncf %34 : vector<8x16xf32> to vector<8x16xbf16>
    %cst_17 = arith.constant dense<0.000000e+00> : vector<8x16xf32>
    %54 = tpu.matmul %52, %53, %cst_17 {dimension_numbers = #tpu.dot_dimension_numbers<[1], [0], [0], [1], [0, 0, 1, 1], [], []>} : vector<8x8xbf16>, vector<8x16xbf16>, vector<8x16xf32> -> vector<8x16xf32>
    %55 = vector.extract_strided_slice %8 {offsets = [0, 32], sizes = [8, 16], strides = [1, 1]} : vector<8x192xf32> to vector<8x16xf32>
    %56 = vector.extract_strided_slice %8 {offsets = [0, 96], sizes = [8, 16], strides = [1, 1]} : vector<8x192xf32> to vector<8x16xf32>
    %57 = vector.extract_strided_slice %8 {offsets = [0, 160], sizes = [8, 16], strides = [1, 1]} : vector<8x192xf32> to vector<8x16xf32>
    %58 = arith.truncf %55 : vector<8x16xf32> to vector<8x16xbf16>
    %59 = arith.truncf %56 : vector<8x16xf32> to vector<8x16xbf16>
    %cst_18 = arith.constant dense<0.000000e+00> : vector<8x8xf32>
    %60 = tpu.matmul %58, %59, %cst_18 {dimension_numbers = #tpu.dot_dimension_numbers<[1], [1], [0], [0], [0, 0, 1, 0], [], []>} : vector<8x16xbf16>, vector<8x16xbf16>, vector<8x8xf32> -> vector<8x8xf32>
    %cst_19 = arith.constant 2.500000e-01 : f32
    %61 = vector.broadcast %cst_19 : f32 to vector<8x8xf32>
    %62 = arith.mulf %60, %61 : vector<8x8xf32>
    %63 = vector.broadcast %2 : vector<1x8xf32> to vector<8x8xf32>
    %64 = arith.addf %62, %63 : vector<8x8xf32>
    %cst_20 = arith.constant dense<0xFF800000> : vector<8xf32>
    %65 = vector.multi_reduction <maximumf>, %64, %cst_20 [1] : vector<8x8xf32> to vector<8xf32>
    %66 = vector.shape_cast %65 : vector<8xf32> to vector<8x1xf32>
    %67 = vector.broadcast %66 : vector<8x1xf32> to vector<8x8xf32>
    %68 = arith.subf %64, %67 : vector<8x8xf32>
    %69 = math.exp %68 : vector<8x8xf32>
    %cst_21 = arith.constant dense<0.000000e+00> : vector<8xf32>
    %70 = vector.multi_reduction <add>, %69, %cst_21 [1] : vector<8x8xf32> to vector<8xf32>
    %71 = vector.shape_cast %70 : vector<8xf32> to vector<8x1xf32>
    %72 = tpu.reciprocal %71 {approx = true} : vector<8x1xf32> -> vector<8x1xf32>
    %73 = vector.broadcast %72 : vector<8x1xf32> to vector<8x8xf32>
    %74 = arith.mulf %69, %73 : vector<8x8xf32>
    %75 = arith.truncf %74 : vector<8x8xf32> to vector<8x8xbf16>
    %76 = arith.truncf %57 : vector<8x16xf32> to vector<8x16xbf16>
    %cst_22 = arith.constant dense<0.000000e+00> : vector<8x16xf32>
    %77 = tpu.matmul %75, %76, %cst_22 {dimension_numbers = #tpu.dot_dimension_numbers<[1], [0], [0], [1], [0, 0, 1, 1], [], []>} : vector<8x8xbf16>, vector<8x16xbf16>, vector<8x16xf32> -> vector<8x16xf32>
    %78 = vector.extract_strided_slice %8 {offsets = [0, 48], sizes = [8, 16], strides = [1, 1]} : vector<8x192xf32> to vector<8x16xf32>
    %79 = vector.extract_strided_slice %8 {offsets = [0, 112], sizes = [8, 16], strides = [1, 1]} : vector<8x192xf32> to vector<8x16xf32>
    %80 = vector.extract_strided_slice %8 {offsets = [0, 176], sizes = [8, 16], strides = [1, 1]} : vector<8x192xf32> to vector<8x16xf32>
    %81 = arith.truncf %78 : vector<8x16xf32> to vector<8x16xbf16>
    %82 = arith.truncf %79 : vector<8x16xf32> to vector<8x16xbf16>
    %cst_23 = arith.constant dense<0.000000e+00> : vector<8x8xf32>
    %83 = tpu.matmul %81, %82, %cst_23 {dimension_numbers = #tpu.dot_dimension_numbers<[1], [1], [0], [0], [0, 0, 1, 0], [], []>} : vector<8x16xbf16>, vector<8x16xbf16>, vector<8x8xf32> -> vector<8x8xf32>
    %cst_24 = arith.constant 2.500000e-01 : f32
    %84 = vector.broadcast %cst_24 : f32 to vector<8x8xf32>
    %85 = arith.mulf %83, %84 : vector<8x8xf32>
    %86 = vector.broadcast %2 : vector<1x8xf32> to vector<8x8xf32>
    %87 = arith.addf %85, %86 : vector<8x8xf32>
    %cst_25 = arith.constant dense<0xFF800000> : vector<8xf32>
    %88 = vector.multi_reduction <maximumf>, %87, %cst_25 [1] : vector<8x8xf32> to vector<8xf32>
    %89 = vector.shape_cast %88 : vector<8xf32> to vector<8x1xf32>
    %90 = vector.broadcast %89 : vector<8x1xf32> to vector<8x8xf32>
    %91 = arith.subf %87, %90 : vector<8x8xf32>
    %92 = math.exp %91 : vector<8x8xf32>
    %cst_26 = arith.constant dense<0.000000e+00> : vector<8xf32>
    %93 = vector.multi_reduction <add>, %92, %cst_26 [1] : vector<8x8xf32> to vector<8xf32>
    %94 = vector.shape_cast %93 : vector<8xf32> to vector<8x1xf32>
    %95 = tpu.reciprocal %94 {approx = true} : vector<8x1xf32> -> vector<8x1xf32>
    %96 = vector.broadcast %95 : vector<8x1xf32> to vector<8x8xf32>
    %97 = arith.mulf %92, %96 : vector<8x8xf32>
    %98 = arith.truncf %97 : vector<8x8xf32> to vector<8x8xbf16>
    %99 = arith.truncf %80 : vector<8x16xf32> to vector<8x16xbf16>
    %cst_27 = arith.constant dense<0.000000e+00> : vector<8x16xf32>
    %100 = tpu.matmul %98, %99, %cst_27 {dimension_numbers = #tpu.dot_dimension_numbers<[1], [0], [0], [1], [0, 0, 1, 1], [], []>} : vector<8x8xbf16>, vector<8x16xbf16>, vector<8x16xf32> -> vector<8x16xf32>
    %101 = tpu.concatenate %31, %54, %77, %100 in 1 : vector<8x16xf32>, vector<8x16xf32>, vector<8x16xf32>, vector<8x16xf32> -> vector<8x64xf32>
    %102 = arith.truncf %101 : vector<8x64xf32> to vector<8x64xbf16>
    %c0_28 = arith.constant 0 : index
    %c0_29 = arith.constant 0 : index
    %103 = vector.load %arg5[%c0_28, %c0_29] : memref<64x64xbf16, #tpu.memory_space<vmem>>, vector<64x64xbf16>
    %cst_30 = arith.constant dense<0.000000e+00> : vector<8x64xf32>
    %104 = tpu.matmul %102, %103, %cst_30 {dimension_numbers = #tpu.dot_dimension_numbers<[1], [0], [0], [1], [0, 0, 1, 1], [], []>} : vector<8x64xbf16>, vector<64x64xbf16>, vector<8x64xf32> -> vector<8x64xf32>
    %c0_31 = arith.constant 0 : index
    %c0_32 = arith.constant 0 : index
    %105 = vector.load %arg6[%c0_31, %c0_32] : memref<1x64xf32, #tpu.memory_space<vmem>>, vector<1x64xf32>
    %106 = vector.broadcast %105 : vector<1x64xf32> to vector<8x64xf32>
    %107 = arith.addf %104, %106 : vector<8x64xf32>
    %108 = arith.addf %107, %0 : vector<8x64xf32>
    %c0_33 = arith.constant 0 : index
    %c0_34 = arith.constant 0 : index
    %109 = vector.load %arg7[%c0_33, %c0_34] : memref<1x64xf32, #tpu.memory_space<vmem>>, vector<1x64xf32>
    %c0_35 = arith.constant 0 : index
    %c0_36 = arith.constant 0 : index
    %110 = vector.load %arg8[%c0_35, %c0_36] : memref<1x64xf32, #tpu.memory_space<vmem>>, vector<1x64xf32>
    %cst_37 = arith.constant dense<0.000000e+00> : vector<8xf32>
    %111 = vector.multi_reduction <add>, %108, %cst_37 [1] : vector<8x64xf32> to vector<8xf32>
    %112 = vector.shape_cast %111 : vector<8xf32> to vector<8x1xf32>
    %cst_38 = arith.constant 6.400000e+01 : f32
    %113 = vector.broadcast %cst_38 : f32 to vector<8x1xf32>
    %114 = arith.divf %112, %113 : vector<8x1xf32>
    %115 = vector.broadcast %114 : vector<8x1xf32> to vector<8x64xf32>
    %116 = arith.subf %108, %115 : vector<8x64xf32>
    %117 = vector.broadcast %114 : vector<8x1xf32> to vector<8x64xf32>
    %118 = arith.subf %108, %117 : vector<8x64xf32>
    %119 = arith.mulf %116, %118 : vector<8x64xf32>
    %cst_39 = arith.constant dense<0.000000e+00> : vector<8xf32>
    %120 = vector.multi_reduction <add>, %119, %cst_39 [1] : vector<8x64xf32> to vector<8xf32>
    %121 = vector.shape_cast %120 : vector<8xf32> to vector<8x1xf32>
    %cst_40 = arith.constant 6.400000e+01 : f32
    %122 = vector.broadcast %cst_40 : f32 to vector<8x1xf32>
    %123 = arith.divf %121, %122 : vector<8x1xf32>
    %124 = vector.broadcast %114 : vector<8x1xf32> to vector<8x64xf32>
    %125 = arith.subf %108, %124 : vector<8x64xf32>
    %cst_41 = arith.constant 9.99999974E-6 : f32
    %126 = vector.broadcast %cst_41 : f32 to vector<8x1xf32>
    %127 = arith.addf %123, %126 : vector<8x1xf32>
    %128 = math.rsqrt %127 : vector<8x1xf32>
    %129 = vector.broadcast %128 : vector<8x1xf32> to vector<8x64xf32>
    %130 = arith.mulf %125, %129 : vector<8x64xf32>
    %131 = vector.broadcast %109 : vector<1x64xf32> to vector<8x64xf32>
    %132 = arith.mulf %130, %131 : vector<8x64xf32>
    %133 = vector.broadcast %110 : vector<1x64xf32> to vector<8x64xf32>
    %134 = arith.addf %132, %133 : vector<8x64xf32>
    %135 = arith.truncf %134 : vector<8x64xf32> to vector<8x64xbf16>
    %c0_42 = arith.constant 0 : index
    %c0_43 = arith.constant 0 : index
    %136 = vector.load %arg9[%c0_42, %c0_43] : memref<64x128xbf16, #tpu.memory_space<vmem>>, vector<64x128xbf16>
    %cst_44 = arith.constant dense<0.000000e+00> : vector<8x128xf32>
    %137 = tpu.matmul %135, %136, %cst_44 {dimension_numbers = #tpu.dot_dimension_numbers<[1], [0], [0], [1], [0, 0, 1, 1], [], []>} : vector<8x64xbf16>, vector<64x128xbf16>, vector<8x128xf32> -> vector<8x128xf32>
    %c0_45 = arith.constant 0 : index
    %c0_46 = arith.constant 0 : index
    %138 = vector.load %arg10[%c0_45, %c0_46] : memref<1x128xf32, #tpu.memory_space<vmem>>, vector<1x128xf32>
    %139 = vector.broadcast %138 : vector<1x128xf32> to vector<8x128xf32>
    %140 = arith.addf %137, %139 : vector<8x128xf32>
    %cst_47 = arith.constant 5.000000e-01 : f32
    %141 = vector.broadcast %cst_47 : f32 to vector<8x128xf32>
    %142 = arith.mulf %141, %140 : vector<8x128xf32>
    %cst_48 = arith.constant 4.471500e-02 : f32
    %143 = vector.broadcast %cst_48 : f32 to vector<8x128xf32>
    %144 = arith.mulf %143, %140 : vector<8x128xf32>
    %145 = arith.mulf %144, %140 : vector<8x128xf32>
    %146 = arith.mulf %145, %140 : vector<8x128xf32>
    %147 = arith.addf %140, %146 : vector<8x128xf32>
    %cst_49 = arith.constant 0.797884583 : f32
    %148 = vector.broadcast %cst_49 : f32 to vector<8x128xf32>
    %149 = arith.mulf %148, %147 : vector<8x128xf32>
    %150 = math.tanh %149 : vector<8x128xf32>
    %cst_50 = arith.constant 1.000000e+00 : f32
    %151 = vector.broadcast %cst_50 : f32 to vector<8x128xf32>
    %152 = arith.addf %151, %150 : vector<8x128xf32>
    %153 = arith.mulf %142, %152 : vector<8x128xf32>
    %154 = arith.truncf %153 : vector<8x128xf32> to vector<8x128xbf16>
    %c0_51 = arith.constant 0 : index
    %c0_52 = arith.constant 0 : index
    %155 = vector.load %arg11[%c0_51, %c0_52] : memref<128x64xbf16, #tpu.memory_space<vmem>>, vector<128x64xbf16>
    %cst_53 = arith.constant dense<0.000000e+00> : vector<8x64xf32>
    %156 = tpu.matmul %154, %155, %cst_53 {dimension_numbers = #tpu.dot_dimension_numbers<[1], [0], [0], [1], [0, 0, 1, 1], [], []>} : vector<8x128xbf16>, vector<128x64xbf16>, vector<8x64xf32> -> vector<8x64xf32>
    %c0_54 = arith.constant 0 : index
    %c0_55 = arith.constant 0 : index
    %157 = vector.load %arg12[%c0_54, %c0_55] : memref<1x64xf32, #tpu.memory_space<vmem>>, vector<1x64xf32>
    %158 = vector.broadcast %157 : vector<1x64xf32> to vector<8x64xf32>
    %159 = arith.addf %156, %158 : vector<8x64xf32>
    %160 = arith.addf %159, %134 : vector<8x64xf32>
    %c0_56 = arith.constant 0 : index
    %c0_57 = arith.constant 0 : index
    %161 = vector.load %arg13[%c0_56, %c0_57] : memref<1x64xf32, #tpu.memory_space<vmem>>, vector<1x64xf32>
    %c0_58 = arith.constant 0 : index
    %c0_59 = arith.constant 0 : index
    %162 = vector.load %arg14[%c0_58, %c0_59] : memref<1x64xf32, #tpu.memory_space<vmem>>, vector<1x64xf32>
    %cst_60 = arith.constant dense<0.000000e+00> : vector<8xf32>
    %163 = vector.multi_reduction <add>, %160, %cst_60 [1] : vector<8x64xf32> to vector<8xf32>
    %164 = vector.shape_cast %163 : vector<8xf32> to vector<8x1xf32>
    %cst_61 = arith.constant 6.400000e+01 : f32
    %165 = vector.broadcast %cst_61 : f32 to vector<8x1xf32>
    %166 = arith.divf %164, %165 : vector<8x1xf32>
    %167 = vector.broadcast %166 : vector<8x1xf32> to vector<8x64xf32>
    %168 = arith.subf %160, %167 : vector<8x64xf32>
    %169 = vector.broadcast %166 : vector<8x1xf32> to vector<8x64xf32>
    %170 = arith.subf %160, %169 : vector<8x64xf32>
    %171 = arith.mulf %168, %170 : vector<8x64xf32>
    %cst_62 = arith.constant dense<0.000000e+00> : vector<8xf32>
    %172 = vector.multi_reduction <add>, %171, %cst_62 [1] : vector<8x64xf32> to vector<8xf32>
    %173 = vector.shape_cast %172 : vector<8xf32> to vector<8x1xf32>
    %cst_63 = arith.constant 6.400000e+01 : f32
    %174 = vector.broadcast %cst_63 : f32 to vector<8x1xf32>
    %175 = arith.divf %173, %174 : vector<8x1xf32>
    %176 = vector.broadcast %166 : vector<8x1xf32> to vector<8x64xf32>
    %177 = arith.subf %160, %176 : vector<8x64xf32>
    %cst_64 = arith.constant 9.99999974E-6 : f32
    %178 = vector.broadcast %cst_64 : f32 to vector<8x1xf32>
    %179 = arith.addf %175, %178 : vector<8x1xf32>
    %180 = math.rsqrt %179 : vector<8x1xf32>
    %181 = vector.broadcast %180 : vector<8x1xf32> to vector<8x64xf32>
    %182 = arith.mulf %177, %181 : vector<8x64xf32>
    %183 = vector.broadcast %161 : vector<1x64xf32> to vector<8x64xf32>
    %184 = arith.mulf %182, %183 : vector<8x64xf32>
    %185 = vector.broadcast %162 : vector<1x64xf32> to vector<8x64xf32>
    %186 = arith.addf %184, %185 : vector<8x64xf32>
    %c0_65 = arith.constant 0 : index
    %c0_66 = arith.constant 0 : index
    %187 = vector.load %arg15[%c0_65, %c0_66] : memref<8x64xf32, #tpu.memory_space<vmem>>, vector<8x64xf32>
    tpu.vector_store %arg15[%c0_65, %c0_66], %186 {strides = array<i32>} : memref<8x64xf32, #tpu.memory_space<vmem>>, vector<8x64xf32>,
    return
  }
  func.func @transform_0(%arg0: i32) -> (i32, i32) {
    %c0_i32 = arith.constant 0 : i32
    %c0_i32_0 = arith.constant 0 : i32
    return %arg0, %c0_i32 : i32, i32
  }
  func.func @transform_1(%arg0: i32) -> (i32, i32, i32) {
    %c0_i32 = arith.constant 0 : i32
    %c0_i32_0 = arith.constant 0 : i32
    %c0_i32_1 = arith.constant 0 : i32
    return %arg0, %c0_i32, %c0_i32_0 : i32, i32, i32
  }
  func.func @transform_2(%arg0: i32) -> (i32, i32) {
    %c0_i32 = arith.constant 0 : i32
    %c0_i32_0 = arith.constant 0 : i32
    %c0_i32_1 = arith.constant 0 : i32
    return %c0_i32, %c0_i32_0 : i32, i32
  }
  func.func @transform_3(%arg0: i32) -> (i32, i32) {
    %c0_i32 = arith.constant 0 : i32
    %c0_i32_0 = arith.constant 0 : i32
    %c0_i32_1 = arith.constant 0 : i32
    return %c0_i32, %c0_i32_0 : i32, i32
  }
  func.func @transform_4(%arg0: i32) -> (i32, i32) {
    %c0_i32 = arith.constant 0 : i32
    %c0_i32_0 = arith.constant 0 : i32
    %c0_i32_1 = arith.constant 0 : i32
    return %c0_i32, %c0_i32_0 : i32, i32
  }
  func.func @transform_5(%arg0: i32) -> (i32, i32) {
    %c0_i32 = arith.constant 0 : i32
    %c0_i32_0 = arith.constant 0 : i32
    %c0_i32_1 = arith.constant 0 : i32
    return %c0_i32, %c0_i32_0 : i32, i32
  }
  func.func @transform_6(%arg0: i32) -> (i32, i32) {
    %c0_i32 = arith.constant 0 : i32
    %c0_i32_0 = arith.constant 0 : i32
    %c0_i32_1 = arith.constant 0 : i32
    return %c0_i32, %c0_i32_0 : i32, i32
  }
  func.func @transform_7(%arg0: i32) -> (i32, i32) {
    %c0_i32 = arith.constant 0 : i32
    %c0_i32_0 = arith.constant 0 : i32
    %c0_i32_1 = arith.constant 0 : i32
    return %c0_i32, %c0_i32_0 : i32, i32
  }
  func.func @transform_8(%arg0: i32) -> (i32, i32) {
    %c0_i32 = arith.constant 0 : i32
    %c0_i32_0 = arith.constant 0 : i32
    %c0_i32_1 = arith.constant 0 : i32
    return %c0_i32, %c0_i32_0 : i32, i32
  }
  func.func @transform_9(%arg0: i32) -> (i32, i32) {
    %c0_i32 = arith.constant 0 : i32
    %c0_i32_0 = arith.constant 0 : i32
    %c0_i32_1 = arith.constant 0 : i32
    return %c0_i32, %c0_i32_0 : i32, i32
  }
  func.func @transform_10(%arg0: i32) -> (i32, i32) {
    %c0_i32 = arith.constant 0 : i32
    %c0_i32_0 = arith.constant 0 : i32
    %c0_i32_1 = arith.constant 0 : i32
    return %c0_i32, %c0_i32_0 : i32, i32
  }
  func.func @transform_11(%arg0: i32) -> (i32, i32) {
    %c0_i32 = arith.constant 0 : i32
    %c0_i32_0 = arith.constant 0 : i32
    %c0_i32_1 = arith.constant 0 : i32
    return %c0_i32, %c0_i32_0 : i32, i32
  }
  func.func @transform_12(%arg0: i32) -> (i32, i32) {
    %c0_i32 = arith.constant 0 : i32
    %c0_i32_0 = arith.constant 0 : i32
    %c0_i32_1 = arith.constant 0 : i32
    return %c0_i32, %c0_i32_0 : i32, i32
  }
  func.func @transform_13(%arg0: i32) -> (i32, i32) {
    %c0_i32 = arith.constant 0 : i32
    %c0_i32_0 = arith.constant 0 : i32
    %c0_i32_1 = arith.constant 0 : i32
    return %c0_i32, %c0_i32_0 : i32, i32
  }
  func.func @transform_14(%arg0: i32) -> (i32, i32) {
    %c0_i32 = arith.constant 0 : i32
    %c0_i32_0 = arith.constant 0 : i32
    return %arg0, %c0_i32 : i32, i32
  }
}

</mosaic_0001>

<bundles_post_ra>
// kernel: xlmr_forward.7
= control target key start
LH: loop header
LB: loop body
LE: loop exit
PB: predicated region body
PF: predicated region fallthrough
CT: control target
= control target key end

     0   :  { %s179_s0 = inlined_call_operand.vmem [shape: f32[2,64], index: 0, kind: input, shape index: {}]   ;;  %s180_s1 = inlined_call_operand.vmem [shape: bf16[64,128], index: 1, kind: input, shape index: {}]   ;;  %s181_s2 = inlined_call_operand.vmem [shape: f32[1,128], index: 2, kind: input, shape index: {}]   ;;  %s182_s3 = inlined_call_operand.hbm [shape: f32[2,128], index: 3, kind: output, shape index: {}]  }
   0x1   :  { %v108_v0 = vld [vmem:[%s180_s1 + $0x18] sm:$0xff]  ;;  %v107_v1 = vld [vmem:[%s180_s1 + $0x10] sm:$0xff] }
   0x2   :  { %62 = vmatpush.bf16.msra.mxu0 %v108_v0 }
   0x3   :  { %8 = vsyncpa [#allocation3], 0  ;;  %v106_v2 = vld [vmem:[%s180_s1 + $0x8] sm:$0xff]  ;;  %v105_v3 = vld [vmem:[%s180_s1] sm:$0xff]  ;;  %vm54_vm0 = vcmask 523264   ;;  %s137_s24 = smov [#allocation2]  }
   0x4   :  { %v16_v4 = vld [vmem:[%s179_s0] sm:$0x3]  ;;  %s77_s25 = sshll.u32 %s137_s24, 4  ;;  %s79_s28 = sshll.u32 %s182_s3, 4  ;;  %s78_s25 = int_to_ptr.vmem [resolvable:$true] %s77_s25  ;;  %s80_s28 = int_to_ptr.hbm [resolvable:$true] %s79_s28 }
   0x5   :  { %v17_v5 = vpack.c.bf16 %v16_v4, %v16_v4  ;;  %v110_v6 = vld [vmem:[%s181_s2] ss:$0 sm:$0xff] }
   0x6   :  { %63 = vmatpush.bf16.msra.mxu0 %v107_v1 }
   0xa   :  { %64 = vmatpush.bf16.msra.mxu0 %v106_v2 }
   0xe   :  { %65 = vmatpush.bf16.msra.mxu0 %v105_v3 }
  0x11   :  { %104 = vmatmul.msk.bf16.vlgmr.msra.gmra.mxu0 %vm54_vm0, %v17_v5 }
  0x8e   :  { %v67_v7 = vpop.f32.mrf.mxu0 }
  0x8f   :  { %v68_v8 = vadd.f32 %v110_v6, %v67_v7 }
  0x91   :  { %71 = vst [vmem:[#allocation2] sm:$0x3] %v68_v8 }
  0x92   :  { %82 = dma.vmem_to_hbm [thread:$0]  %s78_s25, 32, %s80_s28, [#allocation3]  }
  0x96   :  { %v69_v9 = vpop.f32.mrf.mxu0 }
  0x97   :  { %135 = dma.done.wait [#allocation3], 32  }
  0x98   :  { %136 = vsyncadd [#allocation3], 4294967264 }
  0x99   :  { %87 = vsyncpa [#allocation3], 1 }

// kernel: xlmr_forward.4
= control target key start
LH: loop header
LB: loop body
LE: loop exit
PB: predicated region body
PF: predicated region fallthrough
CT: control target
= control target key end

     0   :  { %vm18_vm0 = vcmask 523264   ;;  %v95_v4 = vmov 64.0   ;;  %s140_s0 = inlined_call_operand.vmem [shape: f32[16,64], index: 0, kind: input, shape index: {}]   ;;  %s141_s1 = inlined_call_operand.vmem [shape: f32[1,64], index: 1, kind: input, shape index: {}]   ;;  %s142_s2 = inlined_call_operand.vmem [shape: f32[1,64], index: 2, kind: input, shape index: {}]   ;;  %s143_s3 = inlined_call_operand.vmem [shape: f32[16,64], index: 3, kind: output, shape index: {}]  }
   0x1   :  { %v14_v0 = vld [vmem:[%s140_s0] sm:$0xff]  ;;  %v15_v2 = vld [vmem:[%s140_s0 + $0x8] sm:$0xff]  ;;  %89 = vrcp.f32 %v95_v4 }
   0x2   :  { %v19_v1 = vsel %vm18_vm0, %v14_v0, 0.0  ;;  %v22_v3 = vsel %vm18_vm0, %v15_v2, 0.0  ;;  %v87_v35 = vld [vmem:[%s141_s1] ss:$0 sm:$0xff] }
   0x3   :  { %20 = vadd.xlane.f32.xlu0 %v19_v1  ;;  %v88_v38 = vld [vmem:[%s142_s2] ss:$0 sm:$0xff] }
   0x7   :  { %v90_v5 = vpop.eup %89 }
   0x8   :  { %v26_v6 = vmul.f32 64.0, %v90_v5  ;;  %vm30_vm1 = vweird.f32 %v90_v5 }
   0xa   :  { %v27_v7 = vsub.f32 1.0, %v26_v6 }
   0xb   :  { %23 = vadd.xlane.f32.xlu0 %v22_v3 }
   0xc   :  { %v28_v8 = vmul.f32 %v90_v5, %v27_v7 }
   0xe   :  { %v29_v9 = vadd.f32 %v90_v5, %v28_v8 }
  0x10   :  { %v31_v10 = vsel %vm30_vm1, %v90_v5, %v29_v9 }
  0x76   :  { %v21_v11 = vpop.xlane.xlu0 %20 }
  0x77   :  { %v32_v12 = vmul.f32 %v31_v10, %v21_v11 }
  0x79   :  { %v34_v13 = vsub.f32 %v14_v0, %v32_v12 }
  0x7b   :  { %v36_v14 = vmul.f32 %v34_v13, %v34_v13 }
  0x7d   :  { %v38_v15 = vsel %vm18_vm0, %v36_v14, 0.0 }
  0x7e   :  { %39 = vadd.xlane.f32.xlu1 %v38_v15  ;;  %v24_v16 = vpop.xlane.xlu0 %23 }
  0x7f   :  { %v33_v17 = vmul.f32 %v31_v10, %v24_v16 }
  0x81   :  { %v35_v18 = vsub.f32 %v15_v2, %v33_v17 }
  0x83   :  { %v37_v19 = vmul.f32 %v35_v18, %v35_v18 }
  0x85   :  { %v41_v20 = vsel %vm18_vm0, %v37_v19, 0.0 }
  0x86   :  { %42 = vadd.xlane.f32.xlu1 %v41_v20 }
  0xf1   :  { %v40_v21 = vpop.xlane.xlu1 %39 }
  0xf2   :  { %v44_v22 = vmul.f32 %v40_v21, %v31_v10 }
  0xf4   :  { %v46_v23 = vadd.f32 1e-05, %v44_v22 }
  0xf6   :  { %91 = vrsqrt.f32 %v46_v23  ;;  %vm54_vm3 = vweird.f32 %v46_v23 }
  0xf9   :  { %v43_v24 = vpop.xlane.xlu1 %42 }
  0xfa   :  { %v45_v25 = vmul.f32 %v43_v24, %v31_v10 }
  0xfc   :  { %v92_v26 = vpop.eup %91  ;;  %v47_v27 = vadd.f32 1e-05, %v45_v25 }
  0xfd   :  { %v49_v28 = vmul.f32 %v92_v26, %v46_v23  ;;  %vm55_vm2 = vweird.f32 %v92_v26 }
  0xfe   :  { %93 = vrsqrt.f32 %v47_v27  ;;  %vm56_vm4 = vmor %vm54_vm3, %vm55_vm2  ;;  %vm64_vm6 = vweird.f32 %v47_v27 }
  0xff   :  { %v50_v29 = vmul.f32 %v92_v26, %v49_v28 }
 0x101   :  { %v51_v30 = vmul.f32 0.5, %v50_v29 }
 0x103   :  { %v52_v31 = vsub.f32 1.5, %v51_v30 }
 0x104   :  { %v94_v32 = vpop.eup %93 }
 0x105   :  { %v53_v33 = vmul.f32 %v92_v26, %v52_v31  ;;  %v59_v34 = vmul.f32 %v94_v32, %v47_v27  ;;  %vm65_vm5 = vweird.f32 %v94_v32 }
 0x106   :  { %vm66_vm7 = vmor %vm64_vm6, %vm65_vm5 }
 0x107   :  { %v57_v36 = vsel %vm56_vm4, %v92_v26, %v53_v33  ;;  %v60_v37 = vmul.f32 %v94_v32, %v59_v34 }
 0x108   :  { %v68_v39 = vmul.f32 %v57_v36, %v34_v13 }
 0x109   :  { %v61_v40 = vmul.f32 0.5, %v60_v37 }
 0x10a   :  { %v73_v41 = vmul.f32 %v87_v35, %v68_v39 }
 0x10b   :  { %v62_v42 = vsub.f32 1.5, %v61_v40 }
 0x10c   :  { %v78_v43 = vadd.f32 %v88_v38, %v73_v41 }
 0x10d   :  { %v63_v44 = vmul.f32 %v94_v32, %v62_v42 }
 0x10e   :  { %80 = vst.msk [vmem:[%s143_s3] sm:$0xff] %vm18_vm0, %v78_v43 }
 0x10f   :  { %v67_v45 = vsel %vm66_vm7, %v94_v32, %v63_v44 }
 0x110   :  { %v69_v46 = vmul.f32 %v67_v45, %v35_v18 }
 0x112   :  { %v74_v47 = vmul.f32 %v87_v35, %v69_v46 }
 0x114   :  { %v79_v48 = vadd.f32 %v88_v38, %v74_v47 }
 0x116   :  { %81 = vst.msk [vmem:[%s143_s3 + $0x8] sm:$0xff] %vm18_vm0, %v79_v48 }

// kernel: xlmr_forward.5
= control target key start
LH: loop header
LB: loop body
LE: loop exit
PB: predicated region body
PF: predicated region fallthrough
CT: control target
= control target key end

     0   :  { %s1433_s29 = smov 0   ;;  %s1647_s0 = inlined_call_operand.vmem [shape: f32[16,64], index: 0, kind: input, shape index: {}]   ;;  %s1648_s1 = inlined_call_operand.vmem [shape: f32[2,1,8], index: 1, kind: input, shape index: {}]   ;;  %s1649_s2 = inlined_call_operand.vmem [shape: bf16[64,192], index: 2, kind: input, shape index: {}]   ;;  %s1650_s3 = inlined_call_operand.vmem [shape: f32[1,192], index: 3, kind: input, shape index: {}]   ;;  %s1651_s4 = inlined_call_operand.vmem [shape: bf16[64,64], index: 4, kind: input, shape index: {}]   ;;  %s1652_s5 = inlined_call_operand.vmem [shape: f32[1,64], index: 5, kind: input, shape index: {}]   ;;  %s1653_s6 = inlined_call_operand.vmem [shape: f32[1,64], index: 6, kind: input, shape index: {}]   ;;  %s1654_s7 = inlined_call_operand.vmem [shape: f32[1,64], index: 7, kind: input, shape index: {}]   ;;  %s1655_s8 = inlined_call_operand.vmem [shape: bf16[64,128], index: 8, kind: input, shape index: {}]   ;;  %s1656_s9 = inlined_call_operand.vmem [shape: f32[1,128], index: 9, kind: input, shape index: {}]   ;;  %s1657_s10 = inlined_call_operand.vmem [shape: bf16[128,64], index: 10, kind: input, shape index: {}]   ;;  %s1658_s11 = inlined_call_operand.vmem [shape: f32[1,64], index: 11, kind: input, shape index: {}]   ;;  %s1659_s12 = inlined_call_operand.vmem [shape: f32[1,64], index: 12, kind: input, shape index: {}]   ;;  %s1660_s13 = inlined_call_operand.vmem [shape: f32[1,64], index: 13, kind: input, shape index: {}]   ;;  %s1661_s14 = inlined_call_operand.vmem [shape: f32[16,64], index: 14, kind: output, shape index: {}]  }
   0x1 LB: > { %s1153_s30 = sadd.s32 4294967295, %s1348_s29   ;;  %p1157_p0 = scmp.ge.s32.totalorder %s1348_s29, 1  ;;  %s1348_s29 = sphi %s1433_s29, %s24_s29  }
   0x2   : > { %p419_p1 = scmp.lt.s32.totalorder %s1348_s29, 3 }
   0x4   : > { %p420_p2 = pnand %p1157_p0, %p419_p1 }
   0x5   : > { %p466_p3 = scmp.lt.s32.totalorder (!%p420_p2), %s1153_s30, 1  ;;  %s1350_s26 = smov (!%p420_p2), 80  }
   0x6   : > { %423 = sbr.rel (%p420_p2) target bundleno = 1922 (0x782), region = 76  ;;  %s1351_s28 = smov (!%p420_p2), 112  }
   0x7   : > { %s1352_s15 = smov (!%p420_p2), 64   ;;  %s1664_s17 = smov (!%p420_p2), 32  }
   0x8   : > { %s1665_s18 = smov (!%p420_p2), 16   ;;  %s1663_s19 = smov (!%p420_p2), 48  }
   0x9   : > { %s1356_s20 = smov (!%p420_p2), 96  }
   0xb   : > { %v1186_v0 = vld [vmem:[%s1649_s2 + $0x30] sm:$0xf]  ;;  %v1277_v1 = vld [vmem:[%s1649_s2 + $0x34] sm:$0xf0]  ;;  %v1178_v2 = vld [vmem:[%s1649_s2 + $0x20] sm:$0xf] }
   0xc   : > { %v1187_v3 = vor.u32 %v1277_v1, %v1186_v0  ;;  %v1275_v4 = vld [vmem:[%s1649_s2 + $0x24] sm:$0xf0]  ;;  %v1170_v5 = vld [vmem:[%s1649_s2 + $0x10] sm:$0xf]  ;;  %v1273_v7 = vld [vmem:[%s1649_s2 + $0x14] sm:$0xf0] }
   0xd   : > { %v1179_v6 = vor.u32 %v1275_v4, %v1178_v2  ;;  %s1671_s30 = smov (!%p466_p3, %s1153_s30), 1  ;;  %v1171_v8 = vor.u32 %v1273_v7, %v1170_v5  ;;  %v1162_v9 = vld [vmem:[%s1649_s2] sm:$0xf]  ;;  %v1271_v10 = vld [vmem:[%s1649_s2 + $0x4] sm:$0xf0]  ;;  %vm535_vm0 = vcmask 523264  }
   0xe   : > { %543 = vmatpush.bf16.msra.mxu0 %v1187_v3  ;;  %s1662_s27 = sshll.u32 %s1671_s30, 3  ;;  %s472_s16 = scalar_lea.vmem %s1648_s1, %s1671_s30  ;;  %v1163_v11 = vor.u32 %v1271_v10, %v1162_v9  ;;  %v1485_v14 = vld [vmem:[%s1650_s3] sm:$0x3]  ;;  %vm569_vm1 = vcmask 130048   ;;  %v1276_v31 = vld [vmem:[%s1649_s2 + $0x34] sm:$0xf] }
   0xf   : > { %s469_s23 = scalar_lea.vmem %s1647_s0, %s1662_s27  ;;  %v491_v15 = vperm.slane %v1485_v14, 0  ;;  %v1188_v32 = vld [vmem:[%s1649_s2 + $0x38] sm:$0xf0]  ;;  %v1274_v34 = vld [vmem:[%s1649_s2 + $0x24] sm:$0xf]  ;;  %vm594_vm2 = vcmask 64512  }
  0x10   : > { %v1477_v12 = vld [vmem:[%s469_s23] sm:$0xff]  ;;  %v1191_v33 = vor.u32 %v1276_v31, %v1188_v32  ;;  %v1180_v35 = vld [vmem:[%s1649_s2 + $0x28] sm:$0xf0]  ;;  %v1272_v37 = vld [vmem:[%s1649_s2 + $0x14] sm:$0xf]  ;;  %v492_v0 = vperm.slane %v1485_v14, 1 }
  0x11   : > { %v480_v13 = vpack.c.bf16 %v1477_v12, %v1477_v12  ;;  %v1183_v36 = vor.u32 %v1274_v34, %v1180_v35  ;;  %v1172_v38 = vld [vmem:[%s1649_s2 + $0x18] sm:$0xf0]  ;;  %v1270_v40 = vld [vmem:[%s1649_s2 + $0x4] sm:$0xf]  ;;  %v1164_v41 = vld [vmem:[%s1649_s2 + $0x8] sm:$0xf0] }
  0x12   : > { %544 = vmatpush.bf16.msra.mxu0 %v1179_v6  ;;  %556 = vmatpush.bf16.msra.mxu1 %v1191_v33  ;;  %v1175_v39 = vor.u32 %v1272_v37, %v1172_v38  ;;  %v1167_v42 = vor.u32 %v1270_v40, %v1164_v41  ;;  %v1310_v43 = vld [vmem:[%s472_s16] ss:$0 sm:$0xff]  ;;  %vm611_vm3 = vcmask 1043456   ;;  %s1666_s16 = smov 16   ;;  %vm816_vm4 = vcmask 261120   ;;  %s1669_s22 = sshll.u32 %s1671_s30, 3 }
  0x13   : > { %vm818_vm5 = vcmask 392192   ;;  %s476_s25 = scalar_lea.vmem %s1661_s14, %s1669_s22 }
  0x16   : > { %545 = vmatpush.bf16.msra.mxu0 %v1171_v8  ;;  %557 = vmatpush.bf16.msra.mxu1 %v1183_v36 }
  0x1a   : > { %546 = vmatpush.bf16.msra.mxu0 %v1163_v11  ;;  %558 = vmatpush.bf16.msra.mxu1 %v1175_v39 }
  0x1d   : > { %1192 = vmatmul.msk.bf16.vlgmr.msra.gmra.mxu0 %vm535_vm0, %v480_v13 }
  0x1e   : > { %559 = vmatpush.bf16.msra.mxu1 %v1167_v42 }
  0x21   : > { %1193 = vmatmul.msk.bf16.vlgmr.msra.gmra.mxu1 %vm535_vm0, %v480_v13 }
  0x9a   : > { %v548_v16 = vpop.f32.mrf.mxu0 }
  0x9b   : > { %v549_v17 = vadd.f32 %v548_v16, %v491_v15 }
  0x9d   : > { %v565_v18 = vpack.c.bf16 %v549_v17, %v549_v17 }
  0x9e   : > { %v561_v3 = vpop.f32.mrf.mxu1 }
  0x9f   : > { %745 = vrot.lane.b32.xlu2 %v565_v18, %s1350_s26  ;;  %628 = vrot.lane.b32.xlu1 %v565_v18, %s1351_s28  ;;  %v562_v4 = vadd.f32 %v561_v3, %v492_v0 }
  0xa0   : > { %567 = vrot.lane.b32.xlu0 %v565_v18, %s1352_s15 }
  0xa1   : > { %v607_v6 = vpack.c.bf16 %v562_v4, %v562_v4  ;;  %v1311_v4 = vld [vmem:[%s1652_s5] ss:$0 sm:$0xff] }
  0xa2   : > { %v550_v19 = vpop.f32.mrf.mxu0 }
  0xa3   : > { %v613_v7 = vsel %vm611_vm3, %v607_v6, 0 }
  0xa6   : > { %v563_v9 = vpop.f32.mrf.mxu1 }
  0xa7   : > { %689 = vrot.lane.b32.xlu2 %v565_v18, %s1664_s17  ;;  %747 = vrot.lane.b32.xlu1 %v565_v18, %s1665_s18 }
  0xa8   : > { %630 = vrot.lane.b32.xlu0 %v565_v18, %s1663_s19 }
  0xb0   : > { %687 = vrot.lane.b32.xlu0 %v565_v18, %s1356_s20 }
  0xf9   : > { %v746_v20 = vpop.permute.xlu2 %745 }
 0x101   : > { %v690_v21 = vpop.permute.xlu2 %689 }
 0x102   : > { %v695_v22 = vsel %vm569_vm1, %v690_v21, 0 }
 0x103   : > { %704 = vmatpush.bf16.xpose.msrb.mxu0 %v695_v22 }
 0x111   : > { %v629_v23 = vpop.permute.xlu1 %628 }
 0x112   : > { %v568_v24 = vpop.permute.xlu0 %567 }
 0x113   : > { %v574_v25 = vsel %vm569_vm1, %v568_v24, 0 }
 0x114   : > { %583 = vmatpush.bf16.xpose.msra.mxu2 %v574_v25 }
 0x119   : > { %v748_v26 = vpop.permute.xlu1 %747 }
 0x11a   : > { %v631_v27 = vpop.permute.xlu0 %630  ;;  %v753_v28 = vsel %vm569_vm1, %v748_v26, 0 }
 0x11b   : > { %1194 = vmatmul.msk.bf16.vlgmr.msra.gmra.mxu2 %vm569_vm1, %v565_v18  ;;  %v636_v29 = vsel %vm569_vm1, %v631_v27, 0 }
 0x11c   : > { %645 = vmatpush.bf16.xpose.msra.mxu3 %v636_v29  ;;  %622 = vmatpush.bf16.msrb.mxu2 %v613_v7 }
 0x122   : > { %v688_v30 = vpop.permute.xlu0 %687 }
 0x123   : > { %1196 = vmatmul.msk.bf16.vlgmr.msra.gmra.mxu3 %vm569_vm1, %v629_v23  ;;  %1198 = vmatmul.msk.bf16.vlgmr.msrb.gmra.mxu0 %vm569_vm1, %v688_v30 }
 0x124   : > { %762 = vmatpush.bf16.xpose.msrb.mxu3 %v753_v28 }
 0x133   : > { %1200 = vmatmul.msk.bf16.vlgmr.msrb.gmra.mxu3 %vm569_vm1, %v746_v20 }
 0x19e   : > { %v585_v44 = vpop.f32.mrf.mxu2 }
 0x19f   : > { %v589_v45 = vmul.f32 0.25, %v585_v44 }
 0x1a0   : > { %v706_v46 = vpop.f32.mrf.mxu0 }
 0x1a1   : > { %v593_v47 = vadd.f32 %v1310_v43, %v589_v45  ;;  %v710_v54 = vmul.f32 0.25, %v706_v46 }
 0x1a3   : > { %v595_v48 = vsel %vm594_vm2, %v593_v47, -inf  ;;  %v711_v57 = vadd.f32 %v1310_v43, %v710_v54 }
 0x1a4   : > { %596 = vmax.xlane.f32.xlu1 %v595_v48 }
 0x1a5   : > { %v712_v58 = vsel %vm594_vm2, %v711_v57, -inf }
 0x1a6   : > { %v587_v49 = vpop.f32.mrf.mxu2  ;;  %v647_v50 = vpop.f32.mrf.mxu3 }
 0x1a7   : > { %v651_v51 = vmul.f32 0.25, %v647_v50 }
 0x1a8   : > { %v708_v52 = vpop.f32.mrf.mxu0 }
 0x1a9   : > { %v652_v53 = vadd.f32 %v1310_v43, %v651_v51 }
 0x1ab   : > { %v653_v55 = vsel %vm594_vm2, %v652_v53, -inf }
 0x1ac   : > { %654 = vmax.xlane.f32.xlu2 %v653_v55 }
 0x1ae   : > { %v649_v56 = vpop.f32.mrf.mxu3 }
 0x1b4   : > { %713 = vmax.xlane.f32.xlu2 %v712_v58  ;;  %v1280_v58 = vld [vmem:[%s1651_s4 + $0x10] sm:$0xff] }
 0x1b6   : > { %v764_v59 = vpop.f32.mrf.mxu3 }
 0x1b7   : > { %v768_v60 = vmul.f32 0.25, %v764_v59  ;;  %v1279_v59 = vld [vmem:[%s1651_s4 + $0x8] sm:$0xff] }
 0x1b9   : > { %v769_v61 = vadd.f32 %v1310_v43, %v768_v60  ;;  %v1278_v60 = vld [vmem:[%s1651_s4] sm:$0xff] }
 0x1bb   : > { %v770_v62 = vsel %vm594_vm2, %v769_v61, -inf }
 0x1bc   : > { %771 = vmax.xlane.f32.xlu0 %v770_v62 }
 0x1be   : > { %v766_v63 = vpop.f32.mrf.mxu3 }
 0x1d0   : > { %666 = vrot.lane.b32.xlu0 %v607_v6, %s1351_s28  ;;  %s1668_s28 = smov 48  }
 0x217   : > { %v597_v1 = vpop.xlane.xlu1 %596 }
 0x218   : > { %v598_v2 = vsub.f32 %v593_v47, %v597_v1 }
 0x21a   : > { %v599_v5 = vmul.f32 1.442695, %v598_v2 }
 0x21c   : > { %1318 = vpow2.f32 %v599_v5 }
 0x21f   : > { %v655_v8 = vpop.xlane.xlu2 %654 }
 0x220   : > { %v656_v15 = vsub.f32 %v652_v53, %v655_v8 }
 0x222   : > { %v1319_v10 = vpop.eup %1318  ;;  %v657_v17 = vmul.f32 1.442695, %v656_v15 }
 0x223   : > { %v601_v11 = vsel %vm594_vm2, %v1319_v10, 0.0 }
 0x224   : > { %602 = vadd.xlane.f32.xlu1 %v601_v11 }
 0x227   : > { %v714_v13 = vpop.xlane.xlu2 %713 }
 0x228   : > { %v715_v14 = vsub.f32 %v711_v57, %v714_v13  ;;  %v1281_v57 = vld [vmem:[%s1651_s4 + $0x18] sm:$0xff] }
 0x229   : > { %864 = vmatpush.bf16.msra.mxu0 %v1281_v57 }
 0x22a   : > { %v716_v16 = vmul.f32 1.442695, %v715_v14 }
 0x22c   : > { %1320 = vpow2.f32 %v716_v16 }
 0x22d   : > { %1322 = vpow2.f32 %v657_v17  ;;  %865 = vmatpush.bf16.msra.mxu0 %v1280_v58 }
 0x22f   : > { %v772_v18 = vpop.xlane.xlu0 %771 }
 0x230   : > { %v773_v19 = vsub.f32 %v769_v61, %v772_v18 }
 0x231   : > { %866 = vmatpush.bf16.msra.mxu0 %v1279_v59 }
 0x232   : > { %v1321_v20 = vpop.eup %1320  ;;  %v774_v21 = vmul.f32 1.442695, %v773_v19 }
 0x233   : > { %v718_v22 = vsel %vm594_vm2, %v1321_v20, 0.0  ;;  %v1323_v23 = vpop.eup %1322 }
 0x234   : > { %1324 = vpow2.f32 %v774_v21  ;;  %719 = vadd.xlane.f32.xlu2 %v718_v22  ;;  %v659_v25 = vsel %vm594_vm2, %v1323_v23, 0.0  ;;  %v1285_v22 = vld [vmem:[%s1655_s8 + $0x18] sm:$0xff] }
 0x235   : > { %867 = vmatpush.bf16.msra.mxu0 %v1278_v60 }
 0x23a   : > { %v1325_v24 = vpop.eup %1324 }
 0x23b   : > { %v776_v26 = vsel %vm594_vm2, %v1325_v24, 0.0 }
 0x23c   : > { %660 = vadd.xlane.f32.xlu2 %v659_v25  ;;  %777 = vadd.xlane.f32.xlu1 %v776_v26  ;;  %v1282_v25 = vld [vmem:[%s1655_s8] sm:$0xff]  ;;  %v1293_v26 = vld [vmem:[%s1657_s10 + $0x38] sm:$0xff] }
 0x23d   : > { %1044 = vmatpush.bf16.msra.mxu3 %v1293_v26 }
 0x242   : > { %v667_v28 = vpop.permute.xlu0 %666 }
 0x243   : > { %v672_v29 = vsel %vm611_vm3, %v667_v28, 0 }
 0x244   : > { %681 = vmatpush.bf16.msra.mxu2 %v672_v29  ;;  %v1292_v29 = vld [vmem:[%s1657_s10 + $0x30] sm:$0xff] }
 0x245   : > { %1045 = vmatpush.bf16.msra.mxu3 %v1292_v29 }
 0x254   : > { %724 = vrot.lane.b32.xlu2 %v607_v6, %s1356_s20 }
 0x255   : > { %782 = vrot.lane.b32.xlu1 %v607_v6, %s1350_s26  ;;  %s1667_s26 = smov 32  }
 0x297   : > { %v603_v27 = vpop.xlane.xlu1 %602 }
 0x298   : > { %1326 = vrcp.f32 %v603_v27 }
 0x29e   : > { %v1327_v30 = vpop.eup %1326 }
 0x29f   : > { %v605_v31 = vmul.f32 %v1327_v30, %v1319_v10  ;;  %v1357_v10 = vmov 64.0  }
 0x2a1   : > { %v606_v32 = vpack.c.bf16 %v605_v31, %v605_v31 }
 0x2a3   : > { %1195 = vmatmul.msk.bf16.vlgmr.msrb.gmra.mxu2 %vm594_vm2, %v606_v32 }
 0x2a7   : > { %v720_v33 = vpop.xlane.xlu2 %719 }
 0x2a8   : > { %1328 = vrcp.f32 %v720_v33 }
 0x2ae   : > { %v1329_v35 = vpop.eup %1328 }
 0x2af   : > { %v661_v34 = vpop.xlane.xlu2 %660  ;;  %v722_v37 = vmul.f32 %v1329_v35, %v1321_v20  ;;  %v778_v42 = vpop.xlane.xlu1 %777 }
 0x2b0   : > { %1330 = vrcp.f32 %v661_v34 }
 0x2b1   : > { %v723_v43 = vpack.c.bf16 %v722_v37, %v722_v37  ;;  %1332 = vrcp.f32 %v778_v42  ;;  %v1312_v37 = vld [vmem:[%s1653_s6] ss:$0 sm:$0xff] }
 0x2b2   : > { %1334 = vrcp.f32 %v1357_v10 }
 0x2b6   : > { %v1331_v36 = vpop.eup %1330 }
 0x2b7   : > { %v663_v38 = vmul.f32 %v1331_v36, %v1323_v23  ;;  %v725_v39 = vpop.permute.xlu2 %724  ;;  %v1333_v44 = vpop.eup %1332  ;;  %v1284_v23 = vld [vmem:[%s1655_s8 + $0x10] sm:$0xff] }
 0x2b8   : > { %v730_v40 = vsel %vm611_vm3, %v725_v39, 0  ;;  %v780_v45 = vmul.f32 %v1333_v44, %v1325_v24  ;;  %v1335_v11 = vpop.eup %1334  ;;  %v1283_v24 = vld [vmem:[%s1655_s8 + $0x8] sm:$0xff]  ;;  %v1313_v39 = vld [vmem:[%s1654_s7] ss:$0 sm:$0xff] }
 0x2b9   : > { %v664_v41 = vpack.c.bf16 %v663_v38, %v663_v38  ;;  %739 = vmatpush.bf16.msrb.mxu1 %v730_v40  ;;  %v880_v13 = vmul.f32 64.0, %v1335_v11  ;;  %vm884_vm6 = vweird.f32 %v1335_v11  ;;  %v1291_v44 = vld [vmem:[%s1657_s10 + $0x28] sm:$0xff] }
 0x2ba   : > { %v781_v48 = vpack.c.bf16 %v780_v45, %v780_v45  ;;  %1046 = vmatpush.bf16.msra.mxu3 %v1291_v44  ;;  %v1290_v45 = vld [vmem:[%s1657_s10 + $0x20] sm:$0xff] }
 0x2bb   : > { %1197 = vmatmul.msk.bf16.vlgmr.msra.gmra.mxu2 %vm594_vm2, %v664_v41  ;;  %v881_v14 = vsub.f32 1.0, %v880_v13 }
 0x2bc   : > { %1199 = vmatmul.msk.bf16.vlgmr.msrb.gmra.mxu1 %vm594_vm2, %v723_v43 }
 0x2bd   : > { %v882_v15 = vmul.f32 %v1335_v11, %v881_v14  ;;  %957 = vmatpush.bf16.msra.mxu1 %v1285_v22 }
 0x2be   : > { %1047 = vmatpush.bf16.msra.mxu3 %v1290_v45 }
 0x2bf   : > { %v883_v16 = vadd.f32 %v1335_v11, %v882_v15 }
 0x2c1   : > { %v1574_v17 = vsel %vm884_vm6, %v1335_v11, %v883_v16  ;;  %958 = vmatpush.bf16.msra.mxu1 %v1284_v23 }
 0x2c5   : > { %959 = vmatpush.bf16.msra.mxu1 %v1283_v24 }
 0x2c7   : > { %v783_v46 = vpop.permute.xlu1 %782 }
 0x2c8   : > { %v788_v47 = vsel %vm611_vm3, %v783_v46, 0  ;;  %v1289_v46 = vld [vmem:[%s1657_s10 + $0x18] sm:$0xff] }
 0x2c9   : > { %797 = vmatpush.bf16.msrb.mxu2 %v788_v47  ;;  %960 = vmatpush.bf16.msra.mxu1 %v1282_v25  ;;  %v1288_v47 = vld [vmem:[%s1657_s10 + $0x10] sm:$0xff] }
 0x2ca   : > { %1048 = vmatpush.bf16.msra.mxu3 %v1289_v46 }
 0x2cc   : > { %1201 = vmatmul.msk.bf16.vlgmr.msrb.gmra.mxu2 %vm594_vm2, %v781_v48  ;;  %v1287_v48 = vld [vmem:[%s1657_s10 + $0x8] sm:$0xff] }
 0x2ce   : > { %1049 = vmatpush.bf16.msra.mxu3 %v1288_v47 }
 0x2d2   : > { %1050 = vmatpush.bf16.msra.mxu3 %v1287_v48 }
 0x326   : > { %v624_v49 = vpop.f32.mrf.mxu2 }
 0x32e   : > { %v626_v50 = vpop.f32.mrf.mxu2 }
 0x32f   : > { %v1314_v50 = vld [vmem:[%s1656_s9] ss:$0 sm:$0xff] }
 0x339   : > { %v741_v51 = vpop.f32.mrf.mxu1 }
 0x33e   : > { %v683_v52 = vpop.f32.mrf.mxu2 }
 0x33f   : > { %804 = vrot.lane.b32.xlu0 %v683_v52, %s1666_s16 }
 0x341   : > { %v743_v53 = vpop.f32.mrf.mxu1 }
 0x346   : > { %v685_v54 = vpop.f32.mrf.mxu2 }
 0x347   : > { %808 = vrot.lane.b32.xlu0 %v741_v51, %s1667_s26 }
 0x34f   : > { %v799_v55 = vpop.f32.mrf.mxu2 }
 0x350   : > { %812 = vrot.lane.b32.xlu1 %v799_v55, %s1668_s28 }
 0x357   : > { %v801_v56 = vpop.f32.mrf.mxu2 }
 0x3b1   : > { %v805_v61 = vpop.permute.xlu0 %804 }
 0x3b2   : > { %v815_v63 = vsel %vm569_vm1, %v624_v49, %v805_v61  ;;  %v1286_v49 = vld [vmem:[%s1657_s10] sm:$0xff] }
 0x3b3   : > { %1051 = vmatpush.bf16.msra.mxu3 %v1286_v49 }
 0x3b9   : > { %v809_v62 = vpop.permute.xlu0 %808 }
 0x3ba   : > { %v817_v0 = vsel %vm816_vm4, %v815_v63, %v809_v62 }
 0x3c2   : > { %v813_v1 = vpop.permute.xlu1 %812 }
 0x3c3   : > { %v819_v2 = vsel %vm818_vm5, %v817_v0, %v813_v1  ;;  %v1315_v0 = vld [vmem:[%s1658_s11] ss:$0 sm:$0xff] }
 0x3c4   : > { %v820_v3 = vpack.c.bf16 %v819_v2, %v819_v2 }
 0x3c6   : > { %1218 = vmatmul.msk.bf16.vlgmr.msra.gmra.mxu0 %vm535_vm0, %v820_v3 }
 0x443   : > { %v869_v5 = vpop.f32.mrf.mxu0 }
 0x444   : > { %v870_v6 = vadd.f32 %v1311_v4, %v869_v5 }
 0x446   : > { %v873_v7 = vadd.f32 %v870_v6, %v1477_v12 }
 0x448   : > { %v876_v8 = vsel %vm535_vm0, %v873_v7, 0.0 }
 0x449   : > { %877 = vadd.xlane.f32.xlu0 %v876_v8 }
 0x44b   : > { %v871_v9 = vpop.f32.mrf.mxu0 }
 0x4bc   : > { %v878_v18 = vpop.xlane.xlu0 %877 }
 0x4bd   : > { %v886_v19 = vmul.f32 %v1574_v17, %v878_v18 }
 0x4bf   : > { %v887_v20 = vsub.f32 %v873_v7, %v886_v19 }
 0x4c1   : > { %v888_v21 = vmul.f32 %v887_v20, %v887_v20 }
 0x4c3   : > { %v889_v12 = vsel %vm535_vm0, %v888_v21, 0.0 }
 0x4c4   : > { %890 = vadd.xlane.f32.xlu2 %v889_v12  ;;  %v1316_v12 = vld [vmem:[%s1659_s12] ss:$0 sm:$0xff] }
 0x537   : > { %v891_v27 = vpop.xlane.xlu2 %890 }
 0x538   : > { %v892_v28 = vmul.f32 %v891_v27, %v1574_v17 }
 0x53a   : > { %v893_v30 = vadd.f32 1e-05, %v892_v28 }
 0x53c   : > { %1336 = vrsqrt.f32 %v893_v30  ;;  %vm900_vm8 = vweird.f32 %v893_v30 }
 0x542   : > { %v1337_v31 = vpop.eup %1336 }
 0x543   : > { %v895_v32 = vmul.f32 %v1337_v31, %v893_v30  ;;  %vm901_vm7 = vweird.f32 %v1337_v31 }
 0x544   : > { %vm902_vm9 = vmor %vm900_vm8, %vm901_vm7 }
 0x545   : > { %v896_v33 = vmul.f32 %v1337_v31, %v895_v32 }
 0x547   : > { %v897_v34 = vmul.f32 0.5, %v896_v33 }
 0x549   : > { %v898_v35 = vsub.f32 1.5, %v897_v34 }
 0x54b   : > { %v899_v36 = vmul.f32 %v1337_v31, %v898_v35 }
 0x54d   : > { %v903_v38 = vsel %vm902_vm9, %v1337_v31, %v899_v36 }
 0x54e   : > { %v904_v40 = vmul.f32 %v903_v38, %v887_v20 }
 0x550   : > { %v908_v41 = vmul.f32 %v1312_v37, %v904_v40 }
 0x552   : > { %v912_v42 = vadd.f32 %v1313_v39, %v908_v41 }
 0x554   : > { %v913_v43 = vpack.c.bf16 %v912_v42, %v912_v42 }
 0x556   : > { %1235 = vmatmul.msk.bf16.vlgmr.msra.gmra.mxu1 %vm535_vm0, %v913_v43 }
 0x5d3   : > { %v962_v51 = vpop.f32.mrf.mxu1 }
 0x5d4   : > { %v963_v52 = vadd.f32 %v1314_v50, %v962_v51 }
 0x5d6   : > { %v967_v53 = vmul.f32 0.044715, %v963_v52  ;;  %v966_v60 = vmul.f32 0.5, %v963_v52 }
 0x5d8   : > { %v968_v54 = vmul.f32 %v967_v53, %v963_v52 }
 0x5da   : > { %v969_v55 = vmul.f32 %v968_v54, %v963_v52 }
 0x5db   : > { %v964_v56 = vpop.f32.mrf.mxu1 }
 0x5dc   : > { %v970_v57 = vadd.f32 %v969_v55, %v963_v52 }
 0x5de   : > { %v971_v58 = vmul.f32 0.7978846, %v970_v57 }
 0x5e0   : > { %1338 = vtanh.f32 %v971_v58 }
 0x5e6   : > { %v1339_v59 = vpop.eup %1338 }
 0x5e7   : > { %v973_v61 = vadd.f32 1.0, %v1339_v59 }
 0x5e9   : > { %v974_v62 = vmul.f32 %v973_v61, %v966_v60 }
 0x5eb   : > { %v975_v63 = vpack.c.bf16 %v974_v62, %v974_v62 }
 0x5ed   : > { %1052 = vmatmul.bf16.vlgmr.msra.gmra.mxu3 %v975_v63 }
 0x670   : > { %v1053_v1 = vpop.f32.mrf.mxu3 }
 0x671   : > { %v1054_v2 = vadd.f32 %v1315_v0, %v1053_v1 }
 0x673   : > { %v1057_v3 = vadd.f32 %v1054_v2, %v912_v42 }
 0x675   : > { %v1060_v4 = vsel %vm535_vm0, %v1057_v3, 0.0 }
 0x676   : > { %1061 = vadd.xlane.f32.xlu1 %v1060_v4 }
 0x678   : > { %v1055_v5 = vpop.f32.mrf.mxu3 }
 0x6e9   : > { %v1062_v6 = vpop.xlane.xlu1 %1061 }
 0x6ea   : > { %v1063_v7 = vmul.f32 %v1062_v6, %v1574_v17 }
 0x6ec   : > { %v1064_v8 = vsub.f32 %v1057_v3, %v1063_v7 }
 0x6ee   : > { %v1065_v9 = vmul.f32 %v1064_v8, %v1064_v8 }
 0x6f0   : > { %v1066_v10 = vsel %vm535_vm0, %v1065_v9, 0.0 }
 0x6f1   : > { %1067 = vadd.xlane.f32.xlu0 %v1066_v10 }
 0x764   : > { %v1068_v11 = vpop.xlane.xlu0 %1067 }
 0x765   : > { %v1069_v13 = vmul.f32 %v1068_v11, %v1574_v17  ;;  %v1317_v17 = vld [vmem:[%s1660_s13] ss:$0 sm:$0xff] }
 0x767   : > { %v1070_v14 = vadd.f32 1e-05, %v1069_v13 }
 0x769   : > { %1340 = vrsqrt.f32 %v1070_v14  ;;  %vm1077_vm11 = vweird.f32 %v1070_v14 }
 0x76f   : > { %v1341_v15 = vpop.eup %1340 }
 0x770   : > { %v1072_v16 = vmul.f32 %v1341_v15, %v1070_v14  ;;  %vm1078_vm10 = vweird.f32 %v1341_v15 }
 0x771   : > { %vm1079_vm12 = vmor %vm1077_vm11, %vm1078_vm10 }
 0x772   : > { %v1073_v18 = vmul.f32 %v1341_v15, %v1072_v16 }
 0x774   : > { %v1074_v19 = vmul.f32 0.5, %v1073_v18 }
 0x776   : > { %v1075_v20 = vsub.f32 1.5, %v1074_v19 }
 0x778   : > { %v1076_v21 = vmul.f32 %v1341_v15, %v1075_v20 }
 0x77a   : > { %v1080_v22 = vsel %vm1079_vm12, %v1341_v15, %v1076_v21 }
 0x77b   : > { %v1081_v23 = vmul.f32 %v1080_v22, %v1064_v8 }
 0x77d   : > { %v1085_v24 = vmul.f32 %v1316_v12, %v1081_v23 }
 0x77f   : > { %v1089_v25 = vadd.f32 %v1317_v17, %v1085_v24 }
 0x781   : > { %1090 = vst.msk [vmem:[%s476_s25] sm:$0xff] %vm535_vm0, %v1089_v25 }
 0x782 PF: > { %s24_s29 = sadd.s32 1, %s1348_s29  }
 0x783   : > { %p21_p4 = scmp.ge.s32.totalorder %s24_s29, 4  }
 0x785   :  { %23 = sbr.rel (!%p21_p4) target bundleno = 1 (0x1), region = 109 }

</bundles_post_ra>
